<compile_context>
chip_gen: v6e
topology: v6e:2x2x1
jax: 0.10.0
libtpu: 0.0.40
codegen_flags: <defaults>
</compile_context>

<pallas_src>
import jax
import jax.numpy as jnp
from jax import lax
from jax.experimental import pallas as pl
from jax.experimental.pallas import tpu as pltpu


LRELU_SLOPE = 0.1
BN_EPS = 1e-5

_LANE = 128
# Working-set budget per grid step (double-buffered). 24 MiB is safe on every
# generation, including v7x (64 MiB physical VMEM, 32 MiB default scoped).
_VMEM_WORKING_SET_BUDGET = 24 * 1024 * 1024


def _round_up(x, m):
    return (x + m - 1) // m * m


# ---------------------------------------------------------------------------
# Pass 1 kernels: conv matmul (y^T orientation) + per-channel sum / sum-sq.
# Stats outputs are per-image partials [Cp8, 1], resident across the inner
# ("arbitrary") pixel-tile axis; the outer image axis stays "parallel" so
# pass 1 is megacore-shardable on v7x.
# ---------------------------------------------------------------------------
def _stats_kernel(p_ref, w_ref, sum_ref, ssq_ref):
    @pl.when(pl.program_id(1) == 0)
    def _init():
        sum_ref[...] = jnp.zeros_like(sum_ref)
        ssq_ref[...] = jnp.zeros_like(ssq_ref)

    # [Cp8, Kd] @ [Kd, block_m] -> [Cp8, block_m], f32 accumulation on the MXU.
    y = jnp.dot(w_ref[...], p_ref[...], preferred_element_type=jnp.float32)
    sum_ref[...] += jnp.sum(y, axis=1, keepdims=True)
    ssq_ref[...] += jnp.sum(y * y, axis=1, keepdims=True)


def _stats_store_kernel(p_ref, w_ref, y_ref, sum_ref, ssq_ref):
    @pl.when(pl.program_id(1) == 0)
    def _init():
        sum_ref[...] = jnp.zeros_like(sum_ref)
        ssq_ref[...] = jnp.zeros_like(ssq_ref)

    y = jnp.dot(w_ref[...], p_ref[...], preferred_element_type=jnp.float32)
    sum_ref[...] += jnp.sum(y, axis=1, keepdims=True)
    ssq_ref[...] += jnp.sum(y * y, axis=1, keepdims=True)
    y_ref[...] = y.astype(y_ref.dtype)  # stash pre-BN activations for pass 2


# ---------------------------------------------------------------------------
# Pass 2 kernels: BN affine (scale/shift) + LeakyReLU, lane-dense [Cp8, bm].
# ---------------------------------------------------------------------------
def _apply_recompute_kernel(p_ref, w_ref, scale_ref, shift_ref, o_ref):
    y = jnp.dot(w_ref[...], p_ref[...], preferred_element_type=jnp.float32)
    y = y * scale_ref[...] + shift_ref[...]
    o_ref[...] = jnp.maximum(y, LRELU_SLOPE * y).astype(o_ref.dtype)


def _apply_affine_kernel(y_ref, scale_ref, shift_ref, o_ref):
    y = y_ref[...].astype(jnp.float32) * scale_ref[...] + shift_ref[...]
    o_ref[...] = jnp.maximum(y, LRELU_SLOPE * y).astype(o_ref.dtype)


def conv_unit_pallas(x_nchw, w_oihw, bias, gamma, beta, *, stride=1, padding=1,
                     block_m=None, compute_dtype=jnp.bfloat16,
                     out_dtype=jnp.float32, store_prebn=None):
    """Fused ConvUnit forward (training-mode BN). x: [N, Cin, H, W] -> NCHW.

    The Conv2d bias is accepted for API parity but not applied: with
    training-mode BatchNorm a per-channel bias is exactly cancelled by the
    batch-mean subtraction (zero-change simplification).
    """
    del bias  # cancelled by BN mean subtraction
    N, Cin, H, W = x_nchw.shape
    Cout, _, KH, KW = w_oihw.shape
    Ho = (H + 2 * padding - KH) // stride + 1
    Wo = (W + 2 * padding - KW) // stride + 1
    Mi = Ho * Wo                  # pixels per image (pass-2 lane axis)
    M = N * Mi                    # true BN count
    Kd = Cin * KH * KW            # contraction size -- NOT padded
    Cp8 = _round_up(Cout, 8)      # sublane-pad only, no 128-pad of Cout

    cd_b = int(jnp.dtype(compute_dtype).itemsize)
    ob = int(jnp.dtype(out_dtype).itemsize)

    # --- tile size from a VMEM working-set formula ---------------------------
    # per pixel column: 2x patches (dbl buf) + 2x out/y tile + f32 y temps.
    per_col = 2 * Kd * cd_b + 2 * Cp8 * max(ob, cd_b) + 3 * Cp8 * 4
    fixed = 2 * Cp8 * Kd * cd_b + 8 * Cp8 * 4 + (64 << 10)
    auto_bm = max(_LANE, (_VMEM_WORKING_SET_BUDGET - fixed) // per_col)
    bm = auto_bm if block_m is None else block_m
    bm = min(bm, _round_up(Mi, _LANE))
    bm = int(max(_LANE, (bm // _LANE) * _LANE))      # lane-dense multiple of 128
    Mi_pad = _round_up(Mi, bm)
    num_tiles = Mi_pad // bm
    working_set = fixed + per_col * bm
    vmem_limit = int(min(60 << 20, max(32 << 20, 2 * working_set)))

    # --- glue: K-major im2col patches [N, Kd, Mi_pad] -------------------------
    # Cast first, single pad, (Ho,Wo) stays the contiguous minor dim; pad
    # columns are zero so they contribute nothing to the BN sums.
    x_pad = jnp.pad(x_nchw.astype(compute_dtype),
                    ((0, 0), (0, 0), (padding, padding), (padding, padding)))
    taps = []
    for kh in range(KH):
        for kw in range(KW):
            taps.append(lax.slice(
                x_pad, (0, 0, kh, kw),
                (N, Cin, kh + (Ho - 1) * stride + 1, kw + (Wo - 1) * stride + 1),
                (1, 1, stride, stride)))
    patches = jnp.stack(taps, axis=2).reshape(N, Kd, Mi)   # kd = (ci, kh, kw)
    patches = jnp.pad(patches, ((0, 0), (0, 0), (0, Mi_pad - Mi)))

    # PyTorch weight [Cout, Cin, KH, KW] -> [Cp8, Kd] (kd ordering matches).
    w_mat = jnp.pad(w_oihw.reshape(Cout, Kd),
                    ((0, Cp8 - Cout), (0, 0))).astype(compute_dtype)

    # Recompute-vs-store decision: store pre-BN y (in compute_dtype) when the
    # write+read of y is cheaper than re-reading the patch matrix in pass 2.
    if store_prebn is None:
        store_prebn = 2 * Cp8 < Kd

    grid = (N, num_tiles)
    p_spec = pl.BlockSpec((None, Kd, bm), lambda n, i: (n, 0, i))
    w_spec = pl.BlockSpec((Cp8, Kd), lambda n, i: (0, 0))
    vec_spec = pl.BlockSpec((Cp8, 1), lambda n, i: (0, 0))
    tile_spec = pl.BlockSpec((None, Cp8, bm), lambda n, i: (n, 0, i))
    stat_spec = pl.BlockSpec((None, Cp8, 1), lambda n, i: (n, 0, 0))

    mm_flops = 2 * N * Mi_pad * Kd * Cp8

    # --- pass 1: BN batch statistics (+ optionally pre-BN activations) -------
    if store_prebn:
        stats_out_shape = (
            jax.ShapeDtypeStruct((N, Cp8, Mi_pad), compute_dtype),  # pre-BN y
            jax.ShapeDtypeStruct((N, Cp8, 1), jnp.float32),         # sum
            jax.ShapeDtypeStruct((N, Cp8, 1), jnp.float32),         # sum of sq
        )
        stats_out_specs = (tile_spec, stat_spec, stat_spec)
        stats_kernel = _stats_store_kernel
        stats_bytes = (N * Kd * Mi_pad * cd_b + Cp8 * Kd * cd_b
                       + N * Cp8 * Mi_pad * cd_b + 2 * N * Cp8 * 4)
    else:
        stats_out_shape = (
            jax.ShapeDtypeStruct((N, Cp8, 1), jnp.float32),
            jax.ShapeDtypeStruct((N, Cp8, 1), jnp.float32),
        )
        stats_out_specs = (stat_spec, stat_spec)
        stats_kernel = _stats_kernel
        stats_bytes = N * Kd * Mi_pad * cd_b + Cp8 * Kd * cd_b + 2 * N * Cp8 * 4

    stats_out = pl.pallas_call(
        stats_kernel,
        out_shape=stats_out_shape,
        grid=grid,
        in_specs=[p_spec, w_spec],
        out_specs=stats_out_specs,
        compiler_params=pltpu.CompilerParams(
            dimension_semantics=("parallel", "arbitrary"),
            vmem_limit_bytes=vmem_limit),
        cost_estimate=pl.CostEstimate(
            flops=mm_flops + 4 * N * Mi_pad * Cp8,
            transcendentals=0, bytes_accessed=stats_bytes),
    )(patches, w_mat)

    if store_prebn:
        y_pre, sum_n, ssq_n = stats_out
    else:
        sum_n, ssq_n = stats_out

    # --- finalize BN affine (tiny [Cp8, 1] vectors, plain JAX) ----------------
    # NOTE: var = E[y^2] - mean^2 in f32 can cancel for very large M / |mean|;
    # acceptable at these scales -- switch to a shifted/two-pass accumulation if
    # tight parity with PyTorch is ever required for huge batches.
    sum_c = jnp.sum(sum_n, axis=0)     # [Cp8, 1]
    ssq_c = jnp.sum(ssq_n, axis=0)
    mean = sum_c / M
    var = jnp.maximum(ssq_c / M - mean * mean, 0.0)
    gamma_p = jnp.pad(gamma.reshape(Cout, 1), ((0, Cp8 - Cout), (0, 0)))
    beta_p = jnp.pad(beta.reshape(Cout, 1), ((0, Cp8 - Cout), (0, 0)))
    scale = gamma_p * lax.rsqrt(var + BN_EPS)   # padded channels: scale == 0
    shift = beta_p - mean * scale               # padded channels: shift == 0

    # --- pass 2: affine + LeakyReLU, channel-major lane-dense output ----------
    out_shape = jax.ShapeDtypeStruct((N, Cp8, Mi_pad), out_dtype)
    if store_prebn:
        out_mat = pl.pallas_call(
            _apply_affine_kernel,
            out_shape=out_shape,
            grid=grid,
            in_specs=[tile_spec, vec_spec, vec_spec],
            out_specs=tile_spec,
            compiler_params=pltpu.CompilerParams(
                dimension_semantics=("parallel", "parallel"),
                vmem_limit_bytes=vmem_limit),
            cost_estimate=pl.CostEstimate(
                flops=4 * N * Mi_pad * Cp8, transcendentals=0,
                bytes_accessed=N * Cp8 * Mi_pad * (cd_b + ob) + 8 * Cp8),
        )(y_pre, scale, shift)
    else:
        out_mat = pl.pallas_call(
            _apply_recompute_kernel,
            out_shape=out_shape,
            grid=grid,
            in_specs=[p_spec, w_spec, vec_spec, vec_spec],
            out_specs=tile_spec,
            compiler_params=pltpu.CompilerParams(
                dimension_semantics=("parallel", "parallel"),
                vmem_limit_bytes=vmem_limit),
            cost_estimate=pl.CostEstimate(
                flops=mm_flops + 4 * N * Mi_pad * Cp8, transcendentals=0,
                bytes_accessed=(N * Kd * Mi_pad * cd_b + Cp8 * Kd * cd_b
                                + N * Cp8 * Mi_pad * ob + 8 * Cp8)),
        )(patches, w_mat, scale, shift)

    # [N, Cp8, Mi_pad] -> [N, Cout, Ho, Wo]: NCHW-native, no minor-dim transpose.
    return out_mat[:, :Cout, :Mi].reshape(N, Cout, Ho, Wo)


def conv_unit_reference(x_nchw, w_oihw, bias, gamma, beta, *, stride=1, padding=1):
    """Pure-JAX reference of the PyTorch forward (training-mode BN)."""
    y = lax.conv_general_dilated(
        x_nchw, w_oihw,
        window_strides=(stride, stride),
        padding=((padding, padding), (padding, padding)),
        dimension_numbers=("NCHW", "OIHW", "NCHW"),
    ) + bias.reshape(1, -1, 1, 1)
    mean = jnp.mean(y, axis=(0, 2, 3), keepdims=True)
    var = jnp.mean((y - mean) ** 2, axis=(0, 2, 3), keepdims=True)
    y = (y - mean) * lax.rsqrt(var + BN_EPS)
    y = y * gamma.reshape(1, -1, 1, 1) + beta.reshape(1, -1, 1, 1)
    return jnp.where(y >= 0, y, LRELU_SLOPE * y)


if __name__ == "__main__":
    # ConvUnit(in_channels=4, out_channels=8, kernel_size=3, stride=1,
    #          padding=1, bias=True)
    N, Cin, H, W = 2, 4, 16, 16
    Cout, K = 8, 3
    stride, padding = 1, 1

    key = jax.random.PRNGKey(0)
    kx, kw, kb, kg, kbeta = jax.random.split(key, 5)
    x = jax.random.normal(kx, (N, Cin, H, W), dtype=jnp.float32)
    w = jax.random.normal(kw, (Cout, Cin, K, K), dtype=jnp.float32) * 0.1
    b = jax.random.normal(kb, (Cout,), dtype=jnp.float32) * 0.1
    gamma = 1.0 + 0.1 * jax.random.normal(kg, (Cout,), dtype=jnp.float32)
    beta = 0.1 * jax.random.normal(kbeta, (Cout,), dtype=jnp.float32)

    ref = conv_unit_reference(x, w, b, gamma, beta, stride=stride, padding=padding)

    # f32 compute, auto path (stores pre-BN y here since 2*Cp8 < Kd); small
    # block_m so multi-tile stats accumulation (pl.when init + cross-tile sums)
    # is exercised.
    out_a = conv_unit_pallas(x, w, b, gamma, beta, stride=stride, padding=padding,
                             block_m=128, compute_dtype=jnp.float32)
    out_a = jax.block_until_ready(out_a)
    assert out_a.shape == (N, Cout, H, W), out_a.shape
    assert jnp.allclose(out_a, ref, atol=1e-4, rtol=1e-4), float(
        jnp.max(jnp.abs(out_a - ref)))

    # f32 compute, forced matmul-recompute path (the large-Cout regime).
    out_b = conv_unit_pallas(x, w, b, gamma, beta, stride=stride, padding=padding,
                             block_m=128, compute_dtype=jnp.float32,
                             store_prebn=False)
    out_b = jax.block_until_ready(out_b)
    assert out_b.shape == (N, Cout, H, W), out_b.shape
    assert jnp.allclose(out_b, ref, atol=1e-4, rtol=1e-4), float(
        jnp.max(jnp.abs(out_b - ref)))

    # Default bf16-in / f32-accumulate path with auto (VMEM-derived) block_m.
    # BN statistics come from bf16-rounded matmul outputs -> loose tolerance.
    out_c = conv_unit_pallas(x, w, b, gamma, beta, stride=stride, padding=padding)
    out_c = jax.block_until_ready(out_c)
    assert out_c.shape == (N, Cout, H, W), out_c.shape
    assert jnp.allclose(out_c, ref, atol=6e-2, rtol=6e-2), float(
        jnp.max(jnp.abs(out_c - ref)))

    print("KERNEL_OK")
</pallas_src>

<mosaic_0001>
module attributes {stable_mosaic.version = 11 : i64} {
  func.func @_stats_store_kernel(%arg0: i32, %arg1: i32, %arg2: memref<1x36x128xf32, #tpu.memory_space<vmem>>, %arg3: memref<8x36xf32, #tpu.memory_space<vmem>>, %arg4: memref<1x8x128xf32, #tpu.memory_space<vmem>>, %arg5: memref<1x8x1xf32, #tpu.memory_space<vmem>>, %arg6: memref<1x8x1xf32, #tpu.memory_space<vmem>>) attributes {dimension_semantics = [#tpu.dimension_semantics<parallel>, #tpu.dimension_semantics<arbitrary>], iteration_bounds = array<i64: 2, 2>, scalar_prefetch = 0 : i64, scratch_operands = 0 : i64, tpu.core_type = #tpu.core_type<tc>, window_params = [{transform_indices = @transform_0, window_bounds = array<i64: 1, 36, 128>}, {pipeline_mode = #tpu.pipeline_mode<synchronous>, transform_indices = @transform_1, window_bounds = array<i64: 8, 36>}, {transform_indices = @transform_2, window_bounds = array<i64: 1, 8, 128>}, {transform_indices = @transform_3, window_bounds = array<i64: 1, 8, 1>}, {transform_indices = @transform_4, window_bounds = array<i64: 1, 8, 1>}]} {
    %c0_i32 = arith.constant 0 : i32
    %0 = arith.cmpi eq, %arg1, %c0_i32 : i32
    %1 = arith.extui %0 : i1 to i32
    %c0_i32_0 = arith.constant 0 : i32
    %2 = arith.cmpi ne, %1, %c0_i32_0 : i32
    scf.if %2 {
      %cst_22 = arith.constant 0.000000e+00 : f32
      %27 = vector.broadcast %cst_22 : f32 to vector<8x1xf32>
      %c0_23 = arith.constant 0 : index
      %c0_24 = arith.constant 0 : index
      %c0_25 = arith.constant 0 : index
      %28 = vector.load %arg5[%c0_23, %c0_24, %c0_25] : memref<1x8x1xf32, #tpu.memory_space<vmem>>, vector<1x8x1xf32>
      %29 = vector.shape_cast %28 : vector<1x8x1xf32> to vector<8x1xf32>
      %30 = vector.shape_cast %27 : vector<8x1xf32> to vector<1x8x1xf32>
      tpu.vector_store %arg5[%c0_23, %c0_24, %c0_25], %30 {strides = array<i32>} : memref<1x8x1xf32, #tpu.memory_space<vmem>>, vector<1x8x1xf32>,
      %cst_26 = arith.constant 0.000000e+00 : f32
      %31 = vector.broadcast %cst_26 : f32 to vector<8x1xf32>
      %c0_27 = arith.constant 0 : index
      %c0_28 = arith.constant 0 : index
      %c0_29 = arith.constant 0 : index
      %32 = vector.load %arg6[%c0_27, %c0_28, %c0_29] : memref<1x8x1xf32, #tpu.memory_space<vmem>>, vector<1x8x1xf32>
      %33 = vector.shape_cast %32 : vector<1x8x1xf32> to vector<8x1xf32>
      %34 = vector.shape_cast %31 : vector<8x1xf32> to vector<1x8x1xf32>
      tpu.vector_store %arg6[%c0_27, %c0_28, %c0_29], %34 {strides = array<i32>} : memref<1x8x1xf32, #tpu.memory_space<vmem>>, vector<1x8x1xf32>,
    } else {
    }
    %c0 = arith.constant 0 : index
    %c0_1 = arith.constant 0 : index
    %3 = vector.load %arg3[%c0, %c0_1] : memref<8x36xf32, #tpu.memory_space<vmem>>, vector<8x36xf32>
    %c0_2 = arith.constant 0 : index
    %c0_3 = arith.constant 0 : index
    %c0_4 = arith.constant 0 : index
    %4 = vector.load %arg2[%c0_2, %c0_3, %c0_4] : memref<1x36x128xf32, #tpu.memory_space<vmem>>, vector<1x36x128xf32>
    %5 = vector.shape_cast %4 : vector<1x36x128xf32> to vector<36x128xf32>
    %cst = arith.constant dense<0.000000e+00> : vector<8x128xf32>
    %6 = tpu.matmul %3, %5, %cst {dimension_numbers = #tpu.dot_dimension_numbers<[1], [0], [0], [1], [0, 0, 1, 1], [], []>} : vector<8x36xf32>, vector<36x128xf32>, vector<8x128xf32> -> vector<8x128xf32>
    %c0_5 = arith.constant 0 : index
    %c0_6 = arith.constant 0 : index
    %c0_7 = arith.constant 0 : index
    %7 = vector.load %arg5[%c0_5, %c0_6, %c0_7] : memref<1x8x1xf32, #tpu.memory_space<vmem>>, vector<1x8x1xf32>
    %8 = vector.shape_cast %7 : vector<1x8x1xf32> to vector<8x1xf32>
    %cst_8 = arith.constant dense<0.000000e+00> : vector<8xf32>
    %9 = vector.multi_reduction <add>, %6, %cst_8 [1] : vector<8x128xf32> to vector<8xf32>
    %10 = vector.shape_cast %9 : vector<8xf32> to vector<8x1xf32>
    %11 = arith.addf %8, %10 : vector<8x1xf32>
    %c0_9 = arith.constant 0 : index
    %c0_10 = arith.constant 0 : index
    %c0_11 = arith.constant 0 : index
    %12 = vector.load %arg5[%c0_9, %c0_10, %c0_11] : memref<1x8x1xf32, #tpu.memory_space<vmem>>, vector<1x8x1xf32>
    %13 = vector.shape_cast %12 : vector<1x8x1xf32> to vector<8x1xf32>
    %14 = vector.shape_cast %11 : vector<8x1xf32> to vector<1x8x1xf32>
    tpu.vector_store %arg5[%c0_9, %c0_10, %c0_11], %14 {strides = array<i32>} : memref<1x8x1xf32, #tpu.memory_space<vmem>>, vector<1x8x1xf32>,
    %c0_12 = arith.constant 0 : index
    %c0_13 = arith.constant 0 : index
    %c0_14 = arith.constant 0 : index
    %15 = vector.load %arg6[%c0_12, %c0_13, %c0_14] : memref<1x8x1xf32, #tpu.memory_space<vmem>>, vector<1x8x1xf32>
    %16 = vector.shape_cast %15 : vector<1x8x1xf32> to vector<8x1xf32>
    %17 = arith.mulf %6, %6 : vector<8x128xf32>
    %cst_15 = arith.constant dense<0.000000e+00> : vector<8xf32>
    %18 = vector.multi_reduction <add>, %17, %cst_15 [1] : vector<8x128xf32> to vector<8xf32>
    %19 = vector.shape_cast %18 : vector<8xf32> to vector<8x1xf32>
    %20 = arith.addf %16, %19 : vector<8x1xf32>
    %c0_16 = arith.constant 0 : index
    %c0_17 = arith.constant 0 : index
    %c0_18 = arith.constant 0 : index
    %21 = vector.load %arg6[%c0_16, %c0_17, %c0_18] : memref<1x8x1xf32, #tpu.memory_space<vmem>>, vector<1x8x1xf32>
    %22 = vector.shape_cast %21 : vector<1x8x1xf32> to vector<8x1xf32>
    %23 = vector.shape_cast %20 : vector<8x1xf32> to vector<1x8x1xf32>
    tpu.vector_store %arg6[%c0_16, %c0_17, %c0_18], %23 {strides = array<i32>} : memref<1x8x1xf32, #tpu.memory_space<vmem>>, vector<1x8x1xf32>,
    %c0_19 = arith.constant 0 : index
    %c0_20 = arith.constant 0 : index
    %c0_21 = arith.constant 0 : index
    %24 = vector.load %arg4[%c0_19, %c0_20, %c0_21] : memref<1x8x128xf32, #tpu.memory_space<vmem>>, vector<1x8x128xf32>
    %25 = vector.shape_cast %24 : vector<1x8x128xf32> to vector<8x128xf32>
    %26 = vector.shape_cast %6 : vector<8x128xf32> to vector<1x8x128xf32>
    tpu.vector_store %arg4[%c0_19, %c0_20, %c0_21], %26 {strides = array<i32>} : memref<1x8x128xf32, #tpu.memory_space<vmem>>, vector<1x8x128xf32>,
    return
  }
  func.func @transform_0(%arg0: i32, %arg1: i32) -> (i32, i32, i32) {
    %c0_i32 = arith.constant 0 : i32
    %c0_i32_0 = arith.constant 0 : i32
    return %arg0, %c0_i32, %arg1 : i32, i32, i32
  }
  func.func @transform_1(%arg0: i32, %arg1: i32) -> (i32, i32) {
    %c0_i32 = arith.constant 0 : i32
    %c0_i32_0 = arith.constant 0 : i32
    %c0_i32_1 = arith.constant 0 : i32
    return %c0_i32, %c0_i32_0 : i32, i32
  }
  func.func @transform_2(%arg0: i32, %arg1: i32) -> (i32, i32, i32) {
    %c0_i32 = arith.constant 0 : i32
    %c0_i32_0 = arith.constant 0 : i32
    return %arg0, %c0_i32, %arg1 : i32, i32, i32
  }
  func.func @transform_3(%arg0: i32, %arg1: i32) -> (i32, i32, i32) {
    %c0_i32 = arith.constant 0 : i32
    %c0_i32_0 = arith.constant 0 : i32
    %c0_i32_1 = arith.constant 0 : i32
    return %arg0, %c0_i32, %c0_i32_0 : i32, i32, i32
  }
  func.func @transform_4(%arg0: i32, %arg1: i32) -> (i32, i32, i32) {
    %c0_i32 = arith.constant 0 : i32
    %c0_i32_0 = arith.constant 0 : i32
    %c0_i32_1 = arith.constant 0 : i32
    return %arg0, %c0_i32, %c0_i32_0 : i32, i32, i32
  }
}

</mosaic_0001>

<bundles_post_ra>
// kernel: tpu_custom_call.1
= control target key start
LH: loop header
LB: loop body
LE: loop exit
PB: predicated region body
PF: predicated region fallthrough
CT: control target
= control target key end

     0   :  { %s946_s0 = inlined_call_operand.vmem [shape: f32[2,36,256], index: 0, kind: input, shape index: {}]   ;;  %s947_s1 = inlined_call_operand.vmem [shape: f32[8,36], index: 1, kind: input, shape index: {}]   ;;  %s948_s2 = inlined_call_operand.hbm [shape: f32[2,8,256], index: 2, kind: output, shape index: {0}]   ;;  %s949_s3 = inlined_call_operand.vmem [shape: f32[2,8,1], index: 3, kind: output, shape index: {1}]   ;;  %s950_s4 = inlined_call_operand.vmem [shape: f32[2,8,1], index: 4, kind: output, shape index: {2}]  }
   0x1   :  { %951 = sst [smem:[#allocation6_spill]] %s946_s0 }
   0x2   :  { %952 = sst [smem:[#allocation7_spill]] %s947_s1 }
   0x3   :  { %953 = sst [smem:[#allocation8_spill]] %s949_s3 }
   0x4   :  { %10 = vsyncpa [#allocation4], 0 }
   0x5   :  { %12 = vsyncpa [#allocation4 + $0x1], 0  ;;  %s784_s15 = smov 0   ;;  %s786_s16 = smov 0  }
   0x6   :  { %s788_s17 = smov 0   ;;  %s790_s18 = smov 0  }
   0x7   :  { %s792_s19 = smov 0   ;;  %s794_s20 = smov 0  }
   0x8   :  { %s796_s21 = smov 0   ;;  %s798_s22 = smov 0  }
   0x9 LB: > { %s548_s23 = sadd.s32 4294967295, %s753_s22   ;;  %s549_s24 = sadd.s32 4294967294, %s753_s22   ;;  %s753_s22 = sphi %s798_s22, %s18_s22   ;;  %s749_s21 = sphi %s796_s21, %s966_s21   ;;  %s745_s20 = sphi %s794_s20, %s965_s20   ;;  %s741_s19 = sphi %s792_s19, %s964_s19   ;;  %s737_s18 = sphi %s790_s18, %s963_s18   ;;  %s733_s17 = sphi %s788_s17, %s962_s17   ;;  %s729_s16 = sphi %s786_s16, %s961_s16   ;;  %s725_s15 = sphi %s784_s15, %s960_s15  }
   0xa   : > { %s27_s25 = sadd.s32 1, %s745_s20  ;;  %s30_s26 = sadd.s32 1, %s749_s21 }
   0xb   : > { %p28_p0 = scmp.ge.s32.totalorder %s27_s25, 2  ;;  %p46_p1 = scmp.ne.s32.totalorder %s733_s17, %s729_s16 }
   0xc   : > { %p47_p2 = scmp.eq.s32.totalorder %s753_s22, 0  ;;  %p99_p5 = scmp.eq.s32.totalorder %s548_s23, 3 }
   0xd   : > { %s968_s25 = smov (%p28_p0, %s27_s25), 0  ;;  %s970_s26 = smov (!%p28_p0, %s30_s26), %s749_s21 }
   0xe   : > { %s35_s27 = ssub.s32 %s745_s20, %s968_s25  ;;  %p836_p3 = por %p47_p2, %p46_p1 }
   0xf   : > { %p32_p4 = scmp.ge.s32.totalorder %s970_s26, 2  ;;  %p104_p6 = scmp.ne.s32.totalorder %s729_s16, %s725_s15 }
  0x10   : > { %p105_p7 = scmp.eq.s32.totalorder %s549_s24, 3  ;;  %p844_p8 = por %p99_p5, %p46_p1 }
  0x11   : > { %s972_s26 = smov (%p32_p4, %s970_s26), 0  ;;  %s39_s7 = sadd.s32 1, %s733_s17 }
  0x12   : > { %p848_p9 = por %p105_p7, %p104_p6  ;;  %s34_s5 = ssub.s32 %s749_s21, %s972_s26 }
  0x13   : > { %s36_s6 = sor.u32 %s35_s27, %s34_s5  ;;  %p551_p11 = scmp.ge.s32.totalorder %s753_s22, 4 }
  0x14   : > { %p37_p10 = scmp.eq.s32.totalorder %s36_s6, 0 }
  0x15   : > { %176 = sbr.rel (%p551_p11) target bundleno = 38 (0x26), region = 20 }
  0x16   : > { %s856_s8 = scalar_select %p37_p10, %s733_s17, %s39_s7  }
  0x1a   : > { %179 = sbr.rel (!%p836_p3) target bundleno = 38 (0x26), region = 24  ;;  %s181_s9 = sand.u32 (%p836_p3), 1, %s733_s17  }
  0x1b   : > { %s585_s10 = smul.u32 (%p836_p3), 10, %s749_s21  ;;  %s957_s0 = sld [smem:[#allocation6_spill]] (%p836_p3) }
  0x1c   : > { %s584_s11 = smul.u32 (%p836_p3), 40, %s181_s9 }
  0x1d   : > { %s185_s12 = sadd.s32 (%p836_p3), %s745_s20, %s585_s10 }
  0x1e   : > { %s552_s13 = sshll.u32 (%p836_p3), %s185_s12, 3  ;;  %s183_s27 = scalar_lea.vmem (%p836_p3), [#allocation2], %s584_s11 }
  0x21   : > { %s187_s24 = scalar_lea.vmem %s957_s0, %s552_s13 }
  0x22   : > { %v224_v0 = vld [vmem:[%s187_s24] sm:$0xff]  ;;  %v226_v1 = vld [vmem:[%s187_s24 + $0x10] sm:$0xff] }
  0x23   : > { %v228_v2 = vld [vmem:[%s187_s24 + $0x20] sm:$0xff]  ;;  %225 = vst [vmem:[%s183_s27] sm:$0xff] %v224_v0  ;;  %227 = vst [vmem:[%s183_s27 + $0x8] sm:$0xff] %v226_v1  ;;  %v230_v3 = vld [vmem:[%s187_s24 + $0x30] sm:$0xff] }
  0x24   : > { %229 = vst [vmem:[%s183_s27 + $0x10] sm:$0xff] %v228_v2  ;;  %v232_v4 = vld [vmem:[%s187_s24 + $0x40] sm:$0xff]  ;;  %231 = vst [vmem:[%s183_s27 + $0x18] sm:$0xff] %v230_v3 }
  0x25   : > { %233 = vst [vmem:[%s183_s27 + $0x20] sm:$0xff] %v232_v4 }
  0x26 PF: > { %p553_p12 = scmp.ge.s32.totalorder %s753_s22, 1  ;;  %p238_p13 = scmp.lt.s32.totalorder %s753_s22, 5 }
  0x28   : > { %p239_p0 = pnand %p553_p12, %p238_p13 }
  0x29   : > { %s870_s28 = sand.u32 (!%p239_p0), 1, %s729_s16   ;;  %p278_p1 = scmp.lt.s32.totalorder (!%p239_p0), %s741_s19, 1 }
  0x2a   : > { %242 = sbr.rel (%p239_p0) target bundleno = 404 (0x194), region = 62  ;;  %s554_s6 = sshll.u32 (!%p239_p0), %s870_s28, 3 }
  0x2b   : > { %s586_s5 = smul.u32 (!%p239_p0), 40, %s870_s28  ;;  %s958_s3 = sld [smem:[#allocation8_spill]] (!%p239_p0) }
  0x2c   : > { %s886_s27 = scalar_lea.vmem (!%p239_p0), [#allocation3], %s554_s6  ;;  %p557_p2 = scmp.ne.s32.totalorder (!%p239_p0), %s737_s18, 0 }
  0x2d   : > { %s247_s24 = scalar_lea.vmem (!%p239_p0), [#allocation2], %s586_s5 }
  0x2f   : > { %s279_s7 = scalar_select %p278_p1, %s741_s19, 1 }
  0x30   : > { %289 = sbr.rel (%p557_p2) target bundleno = 55 (0x37), region = 70 }
  0x31   : > { %s555_s9 = sshll.u32 %s279_s7, 3 }
  0x32   : > { %s879_s12 = scalar_lea.vmem %s958_s3, %s555_s9  ;;  %s884_s23 = scalar_lea.vmem %s950_s4, %s555_s9 }
  0x35   : > { %vm290_vm0 = vcmask 7168   ;;  %v755_v5 = vmov 0.0  }
  0x36   : > { %291 = vst.msk [vmem:[%s879_s12] sm:$0xff] %vm290_vm0, %v755_v5  ;;  %292 = vst.msk [vmem:[%s884_s23] sm:$0xff] %vm290_vm0, %v755_v5 }
  0x37 PF: > { %v298_v6 = vld [vmem:[%s247_s24 + $0x20] sm:$0xf]  ;;  %vm303_vm1 = vcmask 1043456   ;;  %v756_v7 = vmov 0.0   ;;  %v297_v8 = vld [vmem:[%s247_s24 + $0x18] sm:$0xff]  ;;  %vm757_vm2 = vmmov 0  }
  0x38   : > { %571 = vmatprep.subr.mxu0 %v756_v7  ;;  %581 = vmatprep.mubr.msk.f32.mxu0 %vm757_vm2, %v756_v7  ;;  %v296_v9 = vld [vmem:[%s247_s24 + $0x10] sm:$0xff]  ;;  %v295_v10 = vld [vmem:[%s247_s24 + $0x8] sm:$0xff]  ;;  %v294_v11 = vld [vmem:[%s247_s24] sm:$0xff]  ;;  %s959_s1 = sld [smem:[#allocation7_spill]]  ;;  %vm299_vm3 = vcmask 293888   ;;  %s561_s7 = sshll.u32 %s741_s19, 1 }
  0x39   : > { %572 = vmatpush3.msk.msra.mxu0 %vm303_vm1, %v298_v6  ;;  %s410_s9 = sadd.s32 %s737_s18, %s561_s7  ;;  %s414_s11 = sshll.u32 %s886_s27, 4  ;;  %s415_s11 = int_to_ptr.vmem [resolvable:$true] %s414_s11 }
  0x3a   : > { %573 = vmatprep.subr.mxu0 %v756_v7  ;;  %s562_s10 = sshll.u32 %s410_s9, 7  ;;  %s391_s5 = scalar_lea.sflag [#allocation4], %s870_s28 }
  0x3b   : > { %574 = vmatpush3.msra.mxu0 %v297_v8  ;;  %s412_s24 = scalar_lea.hbm %s948_s2, %s562_s10  ;;  %s661_s6 = scalar_lea.vmem %s415_s11, 128 }
  0x3c   : > { %575 = vmatprep.subr.mxu0 %v756_v7  ;;  %p662_p3 = scmp.ne.s32.totalorder %s415_s11, %s661_s6  ;;  %s758_s0 = smov [#allocation3]  }
  0x3d   : > { %576 = vmatpush3.msra.mxu0 %v296_v9 }
  0x3e   : > { %577 = vmatprep.subr.mxu0 %v756_v7  ;;  %v293_v12 = vld [vmem:[%s959_s1] sm:$0xff]  ;;  %p663_p4 = pnand %p662_p3, %p844_p8  ;;  %s665_s1 = sshll.u32 %s758_s0, 4  ;;  %s666_s1 = int_to_ptr.vmem [resolvable:$false] %s665_s1 }
  0x3f   : > { %578 = vmatpush3.msra.mxu0 %v295_v10  ;;  %s667_s3 = scalar_lea.vmem %s666_s1, 256  ;;  %p668_p6 = scmp.lt.s32.totalorder %s415_s11, %s666_s1 }
  0x40   : > { %579 = vmatprep.subr.mxu0 %v756_v7  ;;  %p664_p5 = pneg %p663_p4  ;;  %p669_p7 = scmp.lt.s32.totalorder %s667_s3, %s661_s6 }
  0x41   : > { %580 = vmatpush3.msra.mxu0 %v294_v11 }
  0x42   : > { %582 = vmatmul.mubr.msk.f32.vlgmr.msra.gmra.mxu0 %vm299_vm3, %v293_v12  ;;  %p670_p10 = por %p669_p7, %p668_p6 }
  0x44   : > { %p671_p11 = pnand %p670_p10, %p664_p5 }
 0x102   : > { %v373_v13 = vpop.f32.mrf.mxu0 }
 0x103   : > { %389 = vst [vmem:[%s886_s27] sm:$0xff] %v373_v13  ;;  %378 = vadd.xlane.f32.xlu0 %v373_v13  ;;  %v384_v15 = vmul.f32 %v373_v13, %v373_v13 }
 0x104   : > { %v583_v14 = vpop.f32.mrf.mxu0 }
 0x107   : > { %385 = vadd.xlane.f32.xlu0 %v384_v15 }
 0x108   : > { %674 = shalt.err (!%p671_p11)
}
 0x109   : > { %s675_s18 = scalar_lea.hbm %s412_s24, 128  ;;  %s679_s27 = scalar_lea.hbm %s948_s2, 512 }
 0x10a   : > { %p676_p12 = scmp.ne.s32.totalorder %s412_s24, %s675_s18  ;;  %p680_p1 = scmp.lt.s32.totalorder %s412_s24, %s948_s2 }
 0x10b   : > { %p681_p2 = scmp.lt.s32.totalorder %s679_s27, %s675_s18 }
 0x10c   : > { %p677_p13 = pnand %p676_p12, %p844_p8 }
 0x10d   : > { %p682_p3 = por %p681_p2, %p680_p1 }
 0x10e   : > { %p678_p0 = pneg %p677_p13 }
 0x110   : > { %p683_p4 = pnand %p682_p3, %p678_p0 }
 0x112   : > { %686 = shalt.err (!%p683_p4)
}
 0x113   : > { %587 = dma.vmem_to_hbm [thread:$0]  (%p844_p8), %s415_s11, 128, %s412_s24, %s391_s5   ;;  %v377_v16 = vld [vmem:[%s879_s12] sm:$0xff]  ;;  %vm381_vm4 = vcmask 7168  }
 0x114   : > { %v383_v19 = vld [vmem:[%s884_s23] sm:$0xff] }
 0x18c   : > { %v379_v17 = vpop.xlane.xlu0 %378 }
 0x18d   : > { %v380_v18 = vadd.f32 %v379_v17, %v377_v16 }
 0x18f   : > { %382 = vst.msk [vmem:[%s879_s12] sm:$0xff] %vm381_vm4, %v380_v18 }
 0x190   : > { %v386_v20 = vpop.xlane.xlu0 %385 }
 0x191   : > { %v387_v21 = vadd.f32 %v386_v20, %v383_v19 }
 0x193   : > { %388 = vst.msk [vmem:[%s884_s23] sm:$0xff] %vm381_vm4, %v387_v21 }
 0x194 PF: > { %p593_p5 = scmp.ge.s32.totalorder %s753_s22, 2  ;;  %s432_s0 = sand.u32 1, %s725_s15  }
 0x195   : > { %s433_s1 = scalar_lea.sflag [#allocation4], %s432_s0 }
 0x196   : > { %p590_p6 = pnand %p593_p5, %p848_p9 }
 0x198   : > { %p591_p7 = pneg %p590_p6 }
 0x19a   : > { %720 = dma.done.wait (%p591_p7), %s433_s1, 128  }
 0x19b   : > { %722 = vsyncadd (%p591_p7), %s433_s1, 4294967168  ;;  %s18_s22 = sadd.s32 1, %s753_s22   ;;  %s960_s15 = smov %s729_s16 }
 0x19c   : > { %p15_p8 = scmp.ge.s32.totalorder %s18_s22, 6   ;;  %s961_s16 = smov %s733_s17 }
 0x19d   : > { %s962_s17 = smov %s856_s8  ;;  %s963_s18 = smov %s745_s20 }
 0x19e   : > { %s964_s19 = smov %s749_s21  ;;  %s965_s20 = smov %s968_s25 }
 0x19f   : > { %s966_s21 = smov %s972_s26  ;;  %17 = sbr.rel (!%p15_p8) target bundleno = 9 (0x9), region = 134 }
 0x1a4   :  { %452 = vsyncpa [#allocation4], 1 }
 0x1a5   :  { %454 = vsyncpa [#allocation4 + $0x1], 1 }

</bundles_post_ra>
